<compile_context>
chip_gen: v7x
topology: tpu7x:2x2x1
jax: 0.10.0
libtpu: 0.0.40
codegen_flags: <defaults>
</compile_context>

<pallas_src>
import random
import functools

import jax
import jax.numpy as jnp
from jax.experimental import pallas as pl
from jax.experimental.pallas import tpu as pltpu


def _dynamicnet_kernel(num_middle, x_ref, w_ref, b_ref, y_ref):
    """One row-tile of DynamicNet, fully resident in VMEM.

    x_ref : (tm, H)   bf16, lanes >= D_in zero-padded
    w_ref : (3, H, H) bf16, [0]=w1 (rows >= D_in zero), [1]=w2,
                            [2]=w3 (cols >= D_out zero)
    b_ref : (3, 1, H) f32,  [2] lanes >= D_out zero
    y_ref : (tm, H)   f32 lane-dense output (caller slices [:, :D_out])
    """
    x = x_ref[...]

    # ---- input_linear + clamp(min=0) --------------------------------------
    # bf16 MXU operands, f32 accumulation.  Bias is added via rank broadcast
    # of the (1, H) row — no materialized (tm, H) broadcast.
    acc = jnp.dot(x, w_ref[0], preferred_element_type=jnp.float32)
    h = jnp.maximum(acc + b_ref[0], 0.0).astype(jnp.bfloat16)

    # ---- middle_linear reused `num_middle` times (static per trace) -------
    # Loop-invariant weight load / bias view hoisted out of the unroll; the
    # activation is carried in bf16 (ReLU commutes with the cast).
    w2 = w_ref[1]
    b2 = b_ref[1]
    for _ in range(num_middle):
        acc = jnp.dot(h, w2, preferred_element_type=jnp.float32)
        h = jnp.maximum(acc + b2, 0.0).astype(jnp.bfloat16)

    # ---- output_linear (no activation), lane-padded to H lanes ------------
    acc = jnp.dot(h, w_ref[2], preferred_element_type=jnp.float32)
    y_ref[...] = (acc + b_ref[2]).astype(y_ref.dtype)


def _pack_params(params):
    """Pack weights -> (3, H, H) bf16 and biases -> (3, 1, H) f32.

    w1 (D_in, H) is zero-padded on rows to (H, H); w3 (H, D_out) and
    b3 (1, D_out) are zero-padded on lanes to H so the output store is
    lane-dense.  Requires D_in <= H and D_out <= H.
    """
    D_in, H = params["w1"].shape
    D_out = params["w3"].shape[1]
    assert D_in <= H and D_out <= H

    w1p = jnp.zeros((H, H), jnp.float32).at[:D_in, :].set(params["w1"])
    w3p = jnp.zeros((H, H), jnp.float32).at[:, :D_out].set(params["w3"])
    w_packed = jnp.stack([w1p, params["w2"], w3p]).astype(jnp.bfloat16)

    b3p = jnp.zeros((1, H), jnp.float32).at[:, :D_out].set(params["b3"])
    b_packed = jnp.stack([params["b1"], params["b2"], b3p]).astype(jnp.float32)
    return w_packed, b_packed


def _pick_tm(n):
    """Largest row tile (<=512) dividing N -> 1 grid step for the demo size.

    On v7x pass tm explicitly so the grid keeps >= 2 steps (one per
    TensorCore) and use dimension_semantics=(pltpu.CORE_PARALLEL,).
    """
    for tm in (512, 256, 128, 64, 32, 16, 8):
        if n % tm == 0:
            return tm
    return n


def dynamicnet_forward(x, params, num_middle, *, tm=None,
                       dimension_semantics=("parallel",)):
    """DynamicNet forward pass as one Pallas kernel.

    x:      (N, D_in) float32
    params: dict with w1 (D_in, H), b1 (1, H), w2 (H, H), b2 (1, H),
            w3 (H, D_out), b3 (1, D_out)   -- weights already (in, out).
    num_middle: static Python int in {0, 1, 2, 3}.
    """
    N, D_in = x.shape
    H = params["w2"].shape[0]
    D_out = params["w3"].shape[1]
    if tm is None:
        tm = _pick_tm(N)
    assert N % tm == 0, "batch must be a multiple of the row tile"

    w_packed, b_packed = _pack_params(params)

    # Lane-pad x to H lanes (zeros) so the input DMA is lane-dense and the
    # first matmul is a uniform (tm, H) x (H, H); w1's zero pad rows make the
    # result identical.  Extra bytes are ~4x but only a few KiB per tile.
    x_padded = jnp.zeros((N, H), jnp.bfloat16).at[:, :D_in].set(
        x.astype(jnp.bfloat16))

    kernel = functools.partial(_dynamicnet_kernel, num_middle)

    y_padded = pl.pallas_call(
        kernel,
        out_shape=jax.ShapeDtypeStruct((N, H), jnp.float32),
        grid_spec=pltpu.PrefetchScalarGridSpec(
            num_scalar_prefetch=0,
            grid=(N // tm,),
            in_specs=[
                # batch tile of rows (lane-dense, H lanes)
                pl.BlockSpec((tm, H), lambda i: (i, 0)),
                # packed weights / biases: constant index_map -> stay
                # VMEM-resident across all grid steps
                pl.BlockSpec((3, H, H), lambda i: (0, 0, 0)),
                pl.BlockSpec((3, 1, H), lambda i: (0, 0, 0)),
            ],
            out_specs=pl.BlockSpec((tm, H), lambda i: (i, 0)),
        ),
        compiler_params=pltpu.CompilerParams(
            dimension_semantics=dimension_semantics),
    )(x_padded, w_packed, b_packed)

    # Strip the lane padding outside the kernel (kernel store stays lane-dense).
    return y_padded[:, :D_out]


def init_params(key, D_in, H, D_out):
    """PyTorch-style uniform(+-1/sqrt(fan_in)) init; weights stored (in, out)."""
    ks = jax.random.split(key, 6)

    def uniform(k, shape, fan_in):
        bound = 1.0 / (fan_in ** 0.5)
        return jax.random.uniform(k, shape, jnp.float32, -bound, bound)

    return {
        "w1": uniform(ks[0], (D_in, H), D_in),
        "b1": uniform(ks[1], (1, H), D_in),
        "w2": uniform(ks[2], (H, H), H),
        "b2": uniform(ks[3], (1, H), H),
        "w3": uniform(ks[4], (H, D_out), H),
        "b3": uniform(ks[5], (1, D_out), H),
    }


def reference_forward(x, params, num_middle):
    # Full-precision f32 reference (kernel uses bf16 MXU operands and carries
    # bf16 activations, so the comparison tolerance accounts for bf16 rounding
    # across up to 5 chained matmuls).
    hp = jax.lax.Precision.HIGHEST
    h = jnp.maximum(jnp.dot(x, params["w1"], precision=hp) + params["b1"], 0.0)
    for _ in range(num_middle):
        h = jnp.maximum(jnp.dot(h, params["w2"], precision=hp)
                        + params["b2"], 0.0)
    return jnp.dot(h, params["w3"], precision=hp) + params["b3"]


if __name__ == "__main__":
    # Small demo shapes; batch fills MXU rows, H=128 is one lane tile.
    N, D_in, H, D_out = 256, 32, 128, 32

    key = jax.random.PRNGKey(0)
    kx, kp = jax.random.split(key)
    x = jax.random.normal(kx, (N, D_in), dtype=jnp.float32)
    params = init_params(kp, D_in, H, D_out)

    # Dynamic control flow: number of middle-layer reuses chosen host-side
    # with a seeded RNG (each distinct value traces a specialized kernel,
    # like PyTorch's per-forward dynamic graph).
    rng = random.Random(0)
    num_middle = rng.randint(0, 3)

    y = dynamicnet_forward(x, params, num_middle)
    y = jax.block_until_ready(y)

    y_ref = reference_forward(x, params, num_middle)
    assert y.shape == (N, D_out)
    assert jnp.allclose(y, y_ref, atol=5e-2, rtol=5e-2), (
        float(jnp.max(jnp.abs(y - y_ref))))

    print("KERNEL_OK")
</pallas_src>

<mosaic_0001>
module attributes {stable_mosaic.version = 11 : i64} {
  func.func @_dynamicnet_kernel(%arg0: i32, %arg1: memref<256x128xbf16, #tpu.memory_space<vmem>>, %arg2: memref<3x128x128xbf16, #tpu.memory_space<vmem>>, %arg3: memref<3x1x128xf32, #tpu.memory_space<vmem>>, %arg4: memref<256x128xf32, #tpu.memory_space<vmem>>) attributes {dimension_semantics = [#tpu.dimension_semantics<parallel>], iteration_bounds = array<i64: 1>, scalar_prefetch = 0 : i64, scratch_operands = 0 : i64, tpu.core_type = #tpu.core_type<tc>, window_params = [{transform_indices = @transform_0, window_bounds = array<i64: 256, 128>}, {pipeline_mode = #tpu.pipeline_mode<synchronous>, transform_indices = @transform_1, window_bounds = array<i64: 3, 128, 128>}, {pipeline_mode = #tpu.pipeline_mode<synchronous>, transform_indices = @transform_2, window_bounds = array<i64: 3, 1, 128>}, {transform_indices = @transform_3, window_bounds = array<i64: 256, 128>}]} {
    %c0 = arith.constant 0 : index
    %c0_0 = arith.constant 0 : index
    %0 = vector.load %arg1[%c0, %c0_0] : memref<256x128xbf16, #tpu.memory_space<vmem>>, vector<256x128xbf16>
    %c0_1 = arith.constant 0 : index
    %c0_2 = arith.constant 0 : index
    %c0_3 = arith.constant 0 : index
    %1 = vector.load %arg2[%c0_1, %c0_2, %c0_3] : memref<3x128x128xbf16, #tpu.memory_space<vmem>>, vector<1x128x128xbf16>
    %2 = vector.shape_cast %1 : vector<1x128x128xbf16> to vector<128x128xbf16>
    %cst = arith.constant dense<0.000000e+00> : vector<256x128xf32>
    %3 = tpu.matmul %0, %2, %cst {dimension_numbers = #tpu.dot_dimension_numbers<[1], [0], [0], [1], [0, 0, 1, 1], [], []>} : vector<256x128xbf16>, vector<128x128xbf16>, vector<256x128xf32> -> vector<256x128xf32>
    %c0_4 = arith.constant 0 : index
    %c0_5 = arith.constant 0 : index
    %c0_6 = arith.constant 0 : index
    %4 = vector.load %arg3[%c0_4, %c0_5, %c0_6] : memref<3x1x128xf32, #tpu.memory_space<vmem>>, vector<1x1x128xf32>
    %5 = vector.shape_cast %4 : vector<1x1x128xf32> to vector<1x128xf32>
    %6 = vector.broadcast %5 : vector<1x128xf32> to vector<256x128xf32>
    %7 = arith.addf %3, %6 : vector<256x128xf32>
    %cst_7 = arith.constant 0.000000e+00 : f32
    %8 = vector.broadcast %cst_7 : f32 to vector<256x128xf32>
    %9 = arith.maximumf %7, %8 : vector<256x128xf32>
    %10 = arith.truncf %9 : vector<256x128xf32> to vector<256x128xbf16>
    %c1 = arith.constant 1 : index
    %c0_8 = arith.constant 0 : index
    %c0_9 = arith.constant 0 : index
    %11 = vector.load %arg2[%c1, %c0_8, %c0_9] : memref<3x128x128xbf16, #tpu.memory_space<vmem>>, vector<1x128x128xbf16>
    %12 = vector.shape_cast %11 : vector<1x128x128xbf16> to vector<128x128xbf16>
    %c1_10 = arith.constant 1 : index
    %c0_11 = arith.constant 0 : index
    %c0_12 = arith.constant 0 : index
    %13 = vector.load %arg3[%c1_10, %c0_11, %c0_12] : memref<3x1x128xf32, #tpu.memory_space<vmem>>, vector<1x1x128xf32>
    %14 = vector.shape_cast %13 : vector<1x1x128xf32> to vector<1x128xf32>
    %cst_13 = arith.constant dense<0.000000e+00> : vector<256x128xf32>
    %15 = tpu.matmul %10, %12, %cst_13 {dimension_numbers = #tpu.dot_dimension_numbers<[1], [0], [0], [1], [0, 0, 1, 1], [], []>} : vector<256x128xbf16>, vector<128x128xbf16>, vector<256x128xf32> -> vector<256x128xf32>
    %16 = vector.broadcast %14 : vector<1x128xf32> to vector<256x128xf32>
    %17 = arith.addf %15, %16 : vector<256x128xf32>
    %cst_14 = arith.constant 0.000000e+00 : f32
    %18 = vector.broadcast %cst_14 : f32 to vector<256x128xf32>
    %19 = arith.maximumf %17, %18 : vector<256x128xf32>
    %20 = arith.truncf %19 : vector<256x128xf32> to vector<256x128xbf16>
    %cst_15 = arith.constant dense<0.000000e+00> : vector<256x128xf32>
    %21 = tpu.matmul %20, %12, %cst_15 {dimension_numbers = #tpu.dot_dimension_numbers<[1], [0], [0], [1], [0, 0, 1, 1], [], []>} : vector<256x128xbf16>, vector<128x128xbf16>, vector<256x128xf32> -> vector<256x128xf32>
    %22 = vector.broadcast %14 : vector<1x128xf32> to vector<256x128xf32>
    %23 = arith.addf %21, %22 : vector<256x128xf32>
    %cst_16 = arith.constant 0.000000e+00 : f32
    %24 = vector.broadcast %cst_16 : f32 to vector<256x128xf32>
    %25 = arith.maximumf %23, %24 : vector<256x128xf32>
    %26 = arith.truncf %25 : vector<256x128xf32> to vector<256x128xbf16>
    %cst_17 = arith.constant dense<0.000000e+00> : vector<256x128xf32>
    %27 = tpu.matmul %26, %12, %cst_17 {dimension_numbers = #tpu.dot_dimension_numbers<[1], [0], [0], [1], [0, 0, 1, 1], [], []>} : vector<256x128xbf16>, vector<128x128xbf16>, vector<256x128xf32> -> vector<256x128xf32>
    %28 = vector.broadcast %14 : vector<1x128xf32> to vector<256x128xf32>
    %29 = arith.addf %27, %28 : vector<256x128xf32>
    %cst_18 = arith.constant 0.000000e+00 : f32
    %30 = vector.broadcast %cst_18 : f32 to vector<256x128xf32>
    %31 = arith.maximumf %29, %30 : vector<256x128xf32>
    %32 = arith.truncf %31 : vector<256x128xf32> to vector<256x128xbf16>
    %c2 = arith.constant 2 : index
    %c0_19 = arith.constant 0 : index
    %c0_20 = arith.constant 0 : index
    %33 = vector.load %arg2[%c2, %c0_19, %c0_20] : memref<3x128x128xbf16, #tpu.memory_space<vmem>>, vector<1x128x128xbf16>
    %34 = vector.shape_cast %33 : vector<1x128x128xbf16> to vector<128x128xbf16>
    %cst_21 = arith.constant dense<0.000000e+00> : vector<256x128xf32>
    %35 = tpu.matmul %32, %34, %cst_21 {dimension_numbers = #tpu.dot_dimension_numbers<[1], [0], [0], [1], [0, 0, 1, 1], [], []>} : vector<256x128xbf16>, vector<128x128xbf16>, vector<256x128xf32> -> vector<256x128xf32>
    %c2_22 = arith.constant 2 : index
    %c0_23 = arith.constant 0 : index
    %c0_24 = arith.constant 0 : index
    %36 = vector.load %arg3[%c2_22, %c0_23, %c0_24] : memref<3x1x128xf32, #tpu.memory_space<vmem>>, vector<1x1x128xf32>
    %37 = vector.shape_cast %36 : vector<1x1x128xf32> to vector<1x128xf32>
    %38 = vector.broadcast %37 : vector<1x128xf32> to vector<256x128xf32>
    %39 = arith.addf %35, %38 : vector<256x128xf32>
    %c0_25 = arith.constant 0 : index
    %c0_26 = arith.constant 0 : index
    %40 = vector.load %arg4[%c0_25, %c0_26] : memref<256x128xf32, #tpu.memory_space<vmem>>, vector<256x128xf32>
    tpu.vector_store %arg4[%c0_25, %c0_26], %39 {strides = array<i32>} : memref<256x128xf32, #tpu.memory_space<vmem>>, vector<256x128xf32>,
    return
  }
  func.func @transform_0(%arg0: i32) -> (i32, i32) {
    %c0_i32 = arith.constant 0 : i32
    %c0_i32_0 = arith.constant 0 : i32
    return %arg0, %c0_i32 : i32, i32
  }
  func.func @transform_1(%arg0: i32) -> (i32, i32, i32) {
    %c0_i32 = arith.constant 0 : i32
    %c0_i32_0 = arith.constant 0 : i32
    %c0_i32_1 = arith.constant 0 : i32
    %c0_i32_2 = arith.constant 0 : i32
    return %c0_i32, %c0_i32_0, %c0_i32_1 : i32, i32, i32
  }
  func.func @transform_2(%arg0: i32) -> (i32, i32, i32) {
    %c0_i32 = arith.constant 0 : i32
    %c0_i32_0 = arith.constant 0 : i32
    %c0_i32_1 = arith.constant 0 : i32
    %c0_i32_2 = arith.constant 0 : i32
    return %c0_i32, %c0_i32_0, %c0_i32_1 : i32, i32, i32
  }
  func.func @transform_3(%arg0: i32) -> (i32, i32) {
    %c0_i32 = arith.constant 0 : i32
    %c0_i32_0 = arith.constant 0 : i32
    return %arg0, %c0_i32 : i32, i32
  }
}

</mosaic_0001>

<bundles_post_ra>
// kernel: tpu_custom_call.1
= control target key start
LH: loop header
LB: loop body
LE: loop exit
PB: predicated region body
PF: predicated region fallthrough
CT: control target
= control target key end

     0   :  { %8 = vsyncpa [#allocation3], 0  ;;  %s2290_s0 = inlined_call_operand.hbm [shape: bf16[256,128], index: 0, kind: input, shape index: {}]   ;;  %s2291_s1 = inlined_call_operand.hbm [shape: bf16[3,128,128], index: 1, kind: input, shape index: {}]   ;;  %s2292_s2 = inlined_call_operand.vmem [shape: f32[3,1,128], index: 2, kind: input, shape index: {}]   ;;  %s2293_s3 = inlined_call_operand.hbm [shape: f32[256,128], index: 3, kind: output, shape index: {}]  }
   0x1   :  { %9 = vsyncpa [#allocation6], 0 }
   0x2   :  { %10 = vsyncpa [#allocation4], 0  ;;  %s1976_s12 = smov [#allocation2]   ;;  %s1904_s16 = scalar_lea.hbm %s2290_s0, 2048 }
   0x3   :  { %s16_s13 = sshll.u32 %s1976_s12, 4  ;;  %p1905_p0 = scmp.ne.s32.totalorder %s2290_s0, %s1904_s16  ;;  %s17_s13 = int_to_ptr.vmem [resolvable:$true] %s16_s13 }
   0x4   :  { %p1908_p1 = scmp.lt.u32.totalorder %s1904_s16, %s2290_s0 }
   0x6   :  { %p1910_p2 = pnand %p1908_p1, %p1905_p0 }
   0x8   :  { %1913 = shalt.err (!%p1910_p2)
}
   0x9   :  { %s1914_s21 = scalar_lea.vmem %s17_s13, 2048  ;;  %p1919_p4 = scmp.lt.s32.totalorder %s17_s13, %s17_s13 }
   0xa   :  { %p1915_p3 = scmp.ne.s32.totalorder %s17_s13, %s1914_s21  ;;  %p1920_p5 = scmp.lt.s32.totalorder %s1914_s21, %s1914_s21 }
   0xc   :  { %p1921_p6 = por %p1920_p5, %p1919_p4 }
   0xe   :  { %p1922_p7 = pnand %p1921_p6, %p1915_p3 }
  0x10   :  { %1925 = shalt.err (!%p1922_p7)
}
  0x11   :  { %s1977_s22 = smov 64   ;;  %s1978_s23 = smov 4  }
  0x12   :  { %22 = dma.hbm_to_vmem [thread:$0]  %s2290_s0, 2048, %s17_s13, [#allocation3], %s1977_s22, %s1977_s22, %s1978_s23  }
  0x13   :  { %s1979_s26 = smov [#allocation5]   ;;  %s1926_s30 = scalar_lea.hbm %s2291_s1, 3072 }
  0x14   :  { %s28_s27 = sshll.u32 %s1979_s26, 4  ;;  %p1927_p8 = scmp.ne.s32.totalorder %s2291_s1, %s1926_s30  ;;  %s29_s27 = int_to_ptr.vmem [resolvable:$true] %s28_s27 }
  0x15   :  { %p1930_p9 = scmp.lt.u32.totalorder %s1926_s30, %s2291_s1 }
  0x17   :  { %p1932_p10 = pnand %p1930_p9, %p1927_p8 }
  0x19   :  { %1935 = shalt.err (!%p1932_p10)
}
  0x1a   :  { %s1936_s8 = scalar_lea.vmem %s29_s27, 3072  ;;  %p1941_p12 = scmp.lt.s32.totalorder %s29_s27, %s29_s27 }
  0x1b   :  { %p1937_p11 = scmp.ne.s32.totalorder %s29_s27, %s1936_s8  ;;  %p1942_p13 = scmp.lt.s32.totalorder %s1936_s8, %s1936_s8 }
  0x1d   :  { %p1943_p0 = por %p1942_p13, %p1941_p12 }
  0x1f   :  { %p1944_p1 = pnand %p1943_p0, %p1937_p11 }
  0x21   :  { %1947 = shalt.err (!%p1944_p1)
}
  0x22   :  { %34 = dma.hbm_to_vmem [thread:$0]  %s2291_s1, 3072, %s29_s27, [#allocation6], %s1977_s22, %s1977_s22, %s1978_s23  }
  0x23   :  { %1970 = dma.done.wait [#allocation3], 2048  }
  0x24   :  { %1971 = vsyncadd [#allocation3], 4294965248 }
  0x25   :  { %1972 = dma.done.wait [#allocation6], 3072  }
  0x26   :  { %1973 = vsyncadd [#allocation6], 4294964224  ;;  %v1864_v0 = vld [vmem:[#allocation5] sm:$0xff]   ;;  %v1865_v1 = vld [vmem:[#allocation5 + $0x8] sm:$0xff]  }
  0x27   :  { %1601 = vmatprep.subr.bf16.mxu0 %v1864_v0  ;;  %1841 = vmatprep.subr.bf16.mxu1 %v1864_v0  ;;  %v1866_v2 = vld [vmem:[#allocation5 + $0x10] sm:$0xff]   ;;  %v1867_v3 = vld [vmem:[#allocation5 + $0x18] sm:$0xff]   ;;  %v1872_v4 = vld [vmem:[#allocation2] sm:$0xff]  }
  0x28   :  { %1602 = vmatpush3.bf16.msra.mxu0 %v1864_v0  ;;  %1849 = vmatpush3.bf16.msra.mxu1 %v1864_v0  ;;  %v1868_v5 = vld [vmem:[#allocation5 + $0x20] sm:$0xff]   ;;  %v1869_v6 = vld [vmem:[#allocation5 + $0x28] sm:$0xff]   ;;  %v1870_v8 = vld [vmem:[#allocation5 + $0x30] sm:$0xff]  }
  0x29   :  { %1603 = vmatprep.subr.bf16.mxu0 %v1865_v1  ;;  %1842 = vmatprep.subr.bf16.mxu1 %v1865_v1  ;;  %v1880_v7 = vld [vmem:[#allocation2 + $0x40] sm:$0xff]   ;;  %v1871_v9 = vld [vmem:[#allocation5 + $0x38] sm:$0xff]   ;;  %v1873_v10 = vld [vmem:[#allocation2 + $0x8] sm:$0xff]  }
  0x2a   :  { %1617 = vmatprep.mubr.bf16.mxu0 %v1872_v4  ;;  %1633 = vmatprep.mubr.bf16.mxu1 %v1880_v7  ;;  %v1881_v11 = vld [vmem:[#allocation2 + $0x48] sm:$0xff]   ;;  %v2027_v12 = vld [vmem:[#allocation5 + $0x40] sm:$0xff]   ;;  %v1874_v13 = vld [vmem:[#allocation2 + $0x10] sm:$0xff]  }
  0x2b   :  { %v1882_v14 = vld [vmem:[#allocation2 + $0x50] sm:$0xff]   ;;  %v2029_v15 = vld [vmem:[#allocation5 + $0x48] sm:$0xff]   ;;  %v1875_v17 = vld [vmem:[#allocation2 + $0x18] sm:$0xff]  }
  0x2c   :  { %1604 = vmatpush3.bf16.msra.mxu0 %v1865_v1  ;;  %1850 = vmatpush3.bf16.msra.mxu1 %v1865_v1  ;;  %v2036_v16 = vld [vmem:[#allocation5 + $0x50] sm:$0xff]   ;;  %v1883_v18 = vld [vmem:[#allocation2 + $0x58] sm:$0xff]   ;;  %v1876_v19 = vld [vmem:[#allocation2 + $0x20] sm:$0xff]  }
  0x2d   :  { %1605 = vmatprep.subr.bf16.mxu0 %v1866_v2  ;;  %1843 = vmatprep.subr.bf16.mxu1 %v1866_v2  ;;  %v1884_v20 = vld [vmem:[#allocation2 + $0x60] sm:$0xff]   ;;  %v2042_v21 = vld [vmem:[#allocation5 + $0x58] sm:$0xff]   ;;  %v1877_v23 = vld [vmem:[#allocation2 + $0x28] sm:$0xff]  }
  0x2e   :  { %v2048_v22 = vld [vmem:[#allocation5 + $0x60] sm:$0xff]   ;;  %v1885_v24 = vld [vmem:[#allocation2 + $0x68] sm:$0xff]   ;;  %v1878_v25 = vld [vmem:[#allocation2 + $0x30] sm:$0xff]  }
  0x2f   :  { %v1886_v26 = vld [vmem:[#allocation2 + $0x70] sm:$0xff]   ;;  %v2054_v27 = vld [vmem:[#allocation5 + $0x68] sm:$0xff]   ;;  %v1879_v28 = vld [vmem:[#allocation2 + $0x38] sm:$0xff]  }
  0x30   :  { %1606 = vmatpush3.bf16.msra.mxu0 %v1866_v2  ;;  %1851 = vmatpush3.bf16.msra.mxu1 %v1866_v2  ;;  %v1887_v29 = vld [vmem:[#allocation2 + $0x78] sm:$0xff]   ;;  %v2063_v30 = vld [vmem:[#allocation5 + $0x70] sm:$0xff]   ;;  %v2079_v32 = vld [vmem:[%s2292_s2] ss:$0 sm:$0xff] }
  0x31   :  { %1607 = vmatprep.subr.bf16.mxu0 %v1867_v3  ;;  %1844 = vmatprep.subr.bf16.mxu1 %v1867_v3  ;;  %v2069_v31 = vld [vmem:[#allocation5 + $0x78] sm:$0xff]  }
  0x34   :  { %1608 = vmatpush3.bf16.msra.mxu0 %v1867_v3  ;;  %1852 = vmatpush3.bf16.msra.mxu1 %v1867_v3 }
  0x35   :  { %1609 = vmatprep.subr.bf16.mxu0 %v1868_v5  ;;  %1845 = vmatprep.subr.bf16.mxu1 %v1868_v5 }
  0x38   :  { %1610 = vmatpush3.bf16.msra.mxu0 %v1868_v5  ;;  %1853 = vmatpush3.bf16.msra.mxu1 %v1868_v5 }
  0x39   :  { %1611 = vmatprep.subr.bf16.mxu0 %v1869_v6  ;;  %1846 = vmatprep.subr.bf16.mxu1 %v1869_v6 }
  0x3c   :  { %1612 = vmatpush3.bf16.msra.mxu0 %v1869_v6  ;;  %1854 = vmatpush3.bf16.msra.mxu1 %v1869_v6 }
  0x3d   :  { %1613 = vmatprep.subr.bf16.mxu0 %v1870_v8  ;;  %1847 = vmatprep.subr.bf16.mxu1 %v1870_v8 }
  0x40   :  { %1614 = vmatpush3.bf16.msra.mxu0 %v1870_v8  ;;  %1855 = vmatpush3.bf16.msra.mxu1 %v1870_v8 }
  0x41   :  { %1615 = vmatprep.subr.bf16.mxu0 %v1871_v9  ;;  %1848 = vmatprep.subr.bf16.mxu1 %v1871_v9 }
  0x44   :  { %1616 = vmatpush3.bf16.msra.mxu0 %v1871_v9  ;;  %1856 = vmatpush3.bf16.msra.mxu1 %v1871_v9 }
  0x45   :  { %1649 = vmatprep.subr.bf16.mxu1 %v2027_v12  ;;  %1697 = vmatprep.subr.bf16.mxu0 %v2027_v12 }
  0x47   :  { %1618 = vmatmul.mubr.bf16.vlgmr.msra.gmra.mrb[0].mxu0 %v1873_v10  ;;  %1634 = vmatmul.mubr.bf16.vlgmr.msra.gmra.mrb[0].mxu1 %v1881_v11 }
  0x48   :  { %1621 = vmatprep.mubr.bf16.mxu0 %v1874_v13  ;;  %1637 = vmatprep.mubr.bf16.mxu1 %v1882_v14 }
  0x49   :  { %1650 = vmatpush3.bf16.msra.mxu1 %v2027_v12  ;;  %1698 = vmatpush3.bf16.msra.mxu0 %v2027_v12 }
  0x4a   :  { %1651 = vmatprep.subr.bf16.mxu1 %v2029_v15  ;;  %1699 = vmatprep.subr.bf16.mxu0 %v2029_v15 }
  0x4d   :  { %1652 = vmatpush3.bf16.msra.mxu1 %v2029_v15  ;;  %1700 = vmatpush3.bf16.msra.mxu0 %v2029_v15 }
  0x4e   :  { %1653 = vmatprep.subr.bf16.mxu1 %v2036_v16  ;;  %1701 = vmatprep.subr.bf16.mxu0 %v2036_v16 }
  0x4f   :  { %1622 = vmatmul.mubr.bf16.gmra.mrb[4].mxu0 %v1875_v17  ;;  %1638 = vmatmul.mubr.bf16.gmra.mrb[4].mxu1 %v1883_v18 }
  0x50   :  { %1625 = vmatprep.mubr.bf16.mxu0 %v1876_v19  ;;  %1641 = vmatprep.mubr.bf16.mxu1 %v1884_v20 }
  0x51   :  { %1654 = vmatpush3.bf16.msra.mxu1 %v2036_v16  ;;  %1702 = vmatpush3.bf16.msra.mxu0 %v2036_v16 }
  0x52   :  { %1655 = vmatprep.subr.bf16.mxu1 %v2042_v21  ;;  %1703 = vmatprep.subr.bf16.mxu0 %v2042_v21 }
  0x55   :  { %1656 = vmatpush3.bf16.msra.mxu1 %v2042_v21  ;;  %1704 = vmatpush3.bf16.msra.mxu0 %v2042_v21 }
  0x56   :  { %1657 = vmatprep.subr.bf16.mxu1 %v2048_v22  ;;  %1705 = vmatprep.subr.bf16.mxu0 %v2048_v22 }
  0x57   :  { %1626 = vmatmul.mubr.bf16.gmra.mrb[8].mxu0 %v1877_v23  ;;  %1642 = vmatmul.mubr.bf16.gmra.mrb[8].mxu1 %v1885_v24 }
  0x58   :  { %1629 = vmatprep.mubr.bf16.mxu0 %v1878_v25  ;;  %1645 = vmatprep.mubr.bf16.mxu1 %v1886_v26 }
  0x59   :  { %1658 = vmatpush3.bf16.msra.mxu1 %v2048_v22  ;;  %1706 = vmatpush3.bf16.msra.mxu0 %v2048_v22 }
  0x5a   :  { %1659 = vmatprep.subr.bf16.mxu1 %v2054_v27  ;;  %1707 = vmatprep.subr.bf16.mxu0 %v2054_v27 }
  0x5d   :  { %1660 = vmatpush3.bf16.msra.mxu1 %v2054_v27  ;;  %1708 = vmatpush3.bf16.msra.mxu0 %v2054_v27 }
  0x5e   :  { %1661 = vmatprep.subr.bf16.mxu1 %v2063_v30  ;;  %1709 = vmatprep.subr.bf16.mxu0 %v2063_v30 }
  0x5f   :  { %1630 = vmatmul.mubr.bf16.gmra.mrb[12].mxu0 %v1879_v28  ;;  %1646 = vmatmul.mubr.bf16.gmra.mrb[12].mxu1 %v1887_v29 }
  0x61   :  { %1662 = vmatpush3.bf16.msra.mxu1 %v2063_v30  ;;  %1710 = vmatpush3.bf16.msra.mxu0 %v2063_v30 }
  0x62   :  { %1663 = vmatprep.subr.bf16.mxu1 %v2069_v31  ;;  %1711 = vmatprep.subr.bf16.mxu0 %v2069_v31 }
  0x65   :  { %1664 = vmatpush3.bf16.msra.mxu1 %v2069_v31  ;;  %1712 = vmatpush3.bf16.msra.mxu0 %v2069_v31 }
  0x66   :  { %1745 = vmatprep.subr.bf16.mxu1 %v2027_v12 }
 0x11a   :  { %v1619_v33 = vpop.f32.mrb[0].mxu0  ;;  %v1635_v34 = vpop.f32.mrb[0].mxu1 }
 0x11b   :  { %v286_v35 = vadd.f32 %v1619_v33, %v2079_v32  ;;  %v277_v36 = vpop.f32.mrb[1].mxu0  ;;  %v350_v37 = vadd.f32 %v1635_v34, %v2079_v32  ;;  %v341_v38 = vpop.f32.mrb[1].mxu1 }
 0x11c   :  { %v278_v39 = vadd.f32 %v2079_v32, %v277_v36  ;;  %v1620_v40 = vpop.f32.mrb[2].mxu0  ;;  %v342_v41 = vadd.f32 %v2079_v32, %v341_v38  ;;  %v1636_v42 = vpop.f32.mrb[2].mxu1 }
 0x11d   :  { %v289_v43 = vadd.f32 %v1620_v40, %v2079_v32  ;;  %v280_v44 = vpop.f32.mrb[3].mxu0  ;;  %v422_v45 = vmax.f32 %v350_v37, 0.0  ;;  %v353_v46 = vadd.f32 %v1636_v42, %v2079_v32  ;;  %v344_v47 = vpop.f32.mrb[3].mxu1  ;;  %v406_v51 = vmax.f32 %v286_v35, 0.0 }
 0x11e   :  { %v281_v48 = vadd.f32 %v2079_v32, %v280_v44  ;;  %v420_v49 = vmax.f32 %v342_v41, 0.0  ;;  %v345_v50 = vadd.f32 %v2079_v32, %v344_v47  ;;  %v404_v54 = vmax.f32 %v278_v39, 0.0 }
 0x11f   :  { %v407_v52 = vmax.f32 %v289_v43, 0.0  ;;  %v423_v53 = vmax.f32 %v353_v46, 0.0 }
 0x120   :  { %v405_v55 = vmax.f32 %v281_v48, 0.0  ;;  %v421_v56 = vmax.f32 %v345_v50, 0.0 }
 0x121   :  { %v437_v57 = vpack.c.bf16 %v407_v52, %v406_v51  ;;  %v2089_v58 = vpack.c.bf16 %v423_v53, %v422_v45 }
 0x122   :  { %v436_v59 = vpack.c.bf16 %v405_v55, %v404_v54  ;;  %v1623_v60 = vpop.f32.mrb[4].mxu0  ;;  %v2091_v61 = vpack.c.bf16 %v421_v56, %v420_v49  ;;  %v1639_v62 = vpop.f32.mrb[4].mxu1 }
 0x123   :  { %v302_v63 = vadd.f32 %v1623_v60, %v2079_v32  ;;  %v293_v0 = vpop.f32.mrb[5].mxu0  ;;  %v366_v1 = vadd.f32 %v1639_v62, %v2079_v32  ;;  %v357_v2 = vpop.f32.mrb[5].mxu1 }
 0x124   :  { %v294_v3 = vadd.f32 %v2079_v32, %v293_v0  ;;  %v1624_v4 = vpop.f32.mrb[6].mxu0  ;;  %1665 = vmatprep.mubr.bf16.mxu1 %v436_v59  ;;  %v358_v5 = vadd.f32 %v2079_v32, %v357_v2  ;;  %v1640_v6 = vpop.f32.mrb[6].mxu1 }
 0x125   :  { %v305_v7 = vadd.f32 %v1624_v4, %v2079_v32  ;;  %v296_v8 = vpop.f32.mrb[7].mxu0  ;;  %1666 = vmatmul.mubr.bf16.vlgmr.msra.gmra.mrb[16].mxu1 %v437_v57  ;;  %v426_v9 = vmax.f32 %v366_v1, 0.0  ;;  %v369_v10 = vadd.f32 %v1640_v6, %v2079_v32  ;;  %v360_v11 = vpop.f32.mrb[7].mxu1  ;;  %v410_v18 = vmax.f32 %v302_v63, 0.0 }
 0x126   :  { %v297_v13 = vadd.f32 %v2079_v32, %v296_v8  ;;  %v424_v14 = vmax.f32 %v358_v5, 0.0  ;;  %v361_v17 = vadd.f32 %v2079_v32, %v360_v11  ;;  %1746 = vmatpush3.bf16.msra.mxu1 %v2027_v12  ;;  %v408_v23 = vmax.f32 %v294_v3, 0.0 }
 0x127   :  { %v411_v19 = vmax.f32 %v305_v7, 0.0  ;;  %v427_v20 = vmax.f32 %v369_v10, 0.0  ;;  %1747 = vmatprep.subr.bf16.mxu1 %v2029_v15 }
 0x128   :  { %v409_v24 = vmax.f32 %v297_v13, 0.0  ;;  %v425_v25 = vmax.f32 %v361_v17, 0.0 }
 0x129   :  { %v439_v26 = vpack.c.bf16 %v411_v19, %v410_v18  ;;  %v2103_v28 = vpack.c.bf16 %v427_v20, %v426_v9 }
 0x12a   :  { %v438_v29 = vpack.c.bf16 %v409_v24, %v408_v23  ;;  %v1627_v33 = vpop.f32.mrb[8].mxu0  ;;  %v2105_v34 = vpack.c.bf16 %v425_v25, %v424_v14  ;;  %v1643_v35 = vpop.f32.mrb[8].mxu1  ;;  %1748 = vmatpush3.bf16.msra.mxu1 %v2029_v15 }
 0x12b   :  { %v318_v12 = vadd.f32 %v1627_v33, %v2079_v32  ;;  %v309_v36 = vpop.f32.mrb[9].mxu0  ;;  %v382_v37 = vadd.f32 %v1643_v35, %v2079_v32  ;;  %v373_v38 = vpop.f32.mrb[9].mxu1  ;;  %1749 = vmatprep.subr.bf16.mxu1 %v2036_v16 }
 0x12c   :  { %v310_v39 = vadd.f32 %v2079_v32, %v309_v36  ;;  %v1628_v40 = vpop.f32.mrb[10].mxu0  ;;  %1669 = vmatprep.mubr.bf16.mxu1 %v438_v29  ;;  %v374_v41 = vadd.f32 %v2079_v32, %v373_v38  ;;  %v1644_v42 = vpop.f32.mrb[10].mxu1 }
 0x12d   :  { %v321_v43 = vadd.f32 %v1628_v40, %v2079_v32  ;;  %v312_v44 = vpop.f32.mrb[11].mxu0  ;;  %1670 = vmatmul.mubr.bf16.gmra.mrb[20].mxu1 %v439_v26  ;;  %v430_v15 = vmax.f32 %v382_v37, 0.0  ;;  %v385_v45 = vadd.f32 %v1644_v42, %v2079_v32  ;;  %v376_v46 = vpop.f32.mrb[11].mxu1  ;;  %v414_v50 = vmax.f32 %v318_v12, 0.0 }
 0x12e   :  { %v313_v47 = vadd.f32 %v2079_v32, %v312_v44  ;;  %v428_v48 = vmax.f32 %v374_v41, 0.0  ;;  %v377_v49 = vadd.f32 %v2079_v32, %v376_v46  ;;  %1750 = vmatpush3.bf16.msra.mxu1 %v2036_v16  ;;  %v412_v53 = vmax.f32 %v310_v39, 0.0 }
 0x12f   :  { %v415_v51 = vmax.f32 %v321_v43, 0.0  ;;  %v431_v52 = vmax.f32 %v385_v45, 0.0  ;;  %1751 = vmatprep.subr.bf16.mxu1 %v2042_v21 }
 0x130   :  { %v413_v54 = vmax.f32 %v313_v47, 0.0  ;;  %v429_v55 = vmax.f32 %v377_v49, 0.0 }
 0x131   :  { %v441_v56 = vpack.c.bf16 %v415_v51, %v414_v50  ;;  %v449_v57 = vpack.c.bf16 %v431_v52, %v430_v15 }
 0x132   :  { %v440_v59 = vpack.c.bf16 %v413_v54, %v412_v53  ;;  %v1631_v60 = vpop.f32.mrb[12].mxu0  ;;  %v448_v62 = vpack.c.bf16 %v429_v55, %v428_v48  ;;  %v1647_v63 = vpop.f32.mrb[12].mxu1  ;;  %1752 = vmatpush3.bf16.msra.mxu1 %v2042_v21 }
 0x133   :  { %v334_v0 = vadd.f32 %v1631_v60, %v2079_v32  ;;  %v325_v1 = vpop.f32.mrb[13].mxu0  ;;  %v398_v16 = vadd.f32 %v1647_v63, %v2079_v32  ;;  %v389_v2 = vpop.f32.mrb[13].mxu1  ;;  %1753 = vmatprep.subr.bf16.mxu1 %v2048_v22 }
 0x134   :  { %v326_v3 = vadd.f32 %v2079_v32, %v325_v1  ;;  %v1632_v4 = vpop.f32.mrb[14].mxu0  ;;  %1673 = vmatprep.mubr.bf16.mxu1 %v440_v59  ;;  %v390_v5 = vadd.f32 %v2079_v32, %v389_v2  ;;  %v1648_v6 = vpop.f32.mrb[14].mxu1 }
 0x135   :  { %v337_v7 = vadd.f32 %v1632_v4, %v2079_v32  ;;  %v328_v8 = vpop.f32.mrb[15].mxu0  ;;  %1674 = vmatmul.mubr.bf16.gmra.mrb[24].mxu1 %v441_v56  ;;  %v434_v21 = vmax.f32 %v398_v16, 0.0  ;;  %v401_v9 = vadd.f32 %v1648_v6, %v2079_v32  ;;  %v392_v10 = vpop.f32.mrb[15].mxu1  ;;  %v418_v17 = vmax.f32 %v334_v0, 0.0 }
 0x136   :  { %v329_v11 = vadd.f32 %v2079_v32, %v328_v8  ;;  %v432_v13 = vmax.f32 %v390_v5, 0.0  ;;  %v393_v14 = vadd.f32 %v2079_v32, %v392_v10  ;;  %1754 = vmatpush3.bf16.msra.mxu1 %v2048_v22  ;;  %v416_v20 = vmax.f32 %v326_v3, 0.0  ;;  %v2143_v22 = vld [vmem:[%s2292_s2 + $0x1] ss:$0 sm:$0xff] }
 0x137   :  { %v419_v18 = vmax.f32 %v337_v7, 0.0  ;;  %v435_v19 = vmax.f32 %v401_v9, 0.0  ;;  %1755 = vmatprep.subr.bf16.mxu1 %v2054_v27 }
 0x138   :  { %v417_v23 = vmax.f32 %v329_v11, 0.0  ;;  %v433_v24 = vmax.f32 %v393_v14, 0.0 }
 0x139   :  { %v443_v25 = vpack.c.bf16 %v419_v18, %v418_v17  ;;  %v451_v26 = vpack.c.bf16 %v435_v19, %v434_v21 }
 0x13a   :  { %v442_v29 = vpack.c.bf16 %v417_v23, %v416_v20  ;;  %v450_v33 = vpack.c.bf16 %v433_v24, %v432_v13  ;;  %1756 = vmatpush3.bf16.msra.mxu1 %v2054_v27 }
 0x13b   :  { %1757 = vmatprep.subr.bf16.mxu1 %v2063_v30 }
 0x13c   :  { %1677 = vmatprep.mubr.bf16.mxu1 %v442_v29 }
 0x13d   :  { %1678 = vmatmul.mubr.bf16.gmra.mrb[28].mxu1 %v443_v25 }
 0x13e   :  { %1681 = vmatprep.mubr.bf16.mxu1 %v2091_v61  ;;  %1758 = vmatpush3.bf16.msra.mxu1 %v2063_v30 }
 0x13f   :  { %1759 = vmatprep.subr.bf16.mxu1 %v2069_v31 }
 0x142   :  { %1760 = vmatpush3.bf16.msra.mxu1 %v2069_v31 }
 0x145   :  { %1682 = vmatmul.mubr.bf16.gmra.mrb[32].mxu1 %v2089_v58 }
 0x146   :  { %1685 = vmatprep.mubr.bf16.mxu1 %v2105_v34 }
 0x14d   :  { %1686 = vmatmul.mubr.bf16.gmra.mrb[36].mxu1 %v2103_v28 }
 0x14e   :  { %1689 = vmatprep.mubr.bf16.mxu1 %v448_v62 }
 0x155   :  { %1690 = vmatmul.mubr.bf16.gmra.mrb[40].mxu1 %v449_v57 }
 0x156   :  { %1693 = vmatprep.mubr.bf16.mxu1 %v450_v33 }
 0x15d   :  { %1694 = vmatmul.mubr.bf16.gmra.mrb[44].mxu1 %v451_v26 }
 0x1f8   :  { %v1667_v27 = vpop.f32.mrb[16].mxu1 }
 0x1f9   :  { %v568_v30 = vadd.f32 %v1667_v27, %v2143_v22  ;;  %v559_v32 = vpop.f32.mrb[17].mxu1 }
 0x1fa   :  { %v560_v31 = vadd.f32 %v2143_v22, %v559_v32  ;;  %v1668_v58 = vpop.f32.mrb[18].mxu1 }
 0x1fb   :  { %v571_v61 = vadd.f32 %v1668_v58, %v2143_v22  ;;  %v562_v34 = vpop.f32.mrb[19].mxu1  ;;  %v688_v35 = vmax.f32 %v568_v30, 0.0 }
 0x1fc   :  { %v563_v28 = vadd.f32 %v2143_v22, %v562_v34  ;;  %v686_v36 = vmax.f32 %v560_v31, 0.0 }
 0x1fd   :  { %v689_v12 = vmax.f32 %v571_v61, 0.0 }
 0x1fe   :  { %v687_v37 = vmax.f32 %v563_v28, 0.0 }
 0x1ff   :  { %v719_v38 = vpack.c.bf16 %v689_v12, %v688_v35 }
 0x200   :  { %v718_v39 = vpack.c.bf16 %v687_v37, %v686_v36  ;;  %v1671_v40 = vpop.f32.mrb[20].mxu1 }
 0x201   :  { %v584_v41 = vadd.f32 %v1671_v40, %v2143_v22  ;;  %v575_v42 = vpop.f32.mrb[21].mxu1 }
 0x202   :  { %v576_v43 = vadd.f32 %v2143_v22, %v575_v42  ;;  %v1672_v44 = vpop.f32.mrb[22].mxu1  ;;  %1713 = vmatprep.mubr.bf16.mxu0 %v718_v39 }
 0x203   :  { %v587_v15 = vadd.f32 %v1672_v44, %v2143_v22  ;;  %v578_v45 = vpop.f32.mrb[23].mxu1  ;;  %1714 = vmatmul.mubr.bf16.vlgmr.msra.gmra.mrb[16].mxu0 %v719_v38  ;;  %v692_v47 = vmax.f32 %v584_v41, 0.0 }
 0x204   :  { %v579_v46 = vadd.f32 %v2143_v22, %v578_v45  ;;  %v690_v49 = vmax.f32 %v576_v43, 0.0 }
 0x205   :  { %v693_v48 = vmax.f32 %v587_v15, 0.0 }
 0x206   :  { %v691_v50 = vmax.f32 %v579_v46, 0.0 }
 0x207   :  { %v721_v51 = vpack.c.bf16 %v693_v48, %v692_v47 }
 0x208   :  { %v720_v52 = vpack.c.bf16 %v691_v50, %v690_v49  ;;  %v1675_v53 = vpop.f32.mrb[24].mxu1 }
 0x209   :  { %v600_v54 = vadd.f32 %v1675_v53, %v2143_v22  ;;  %v591_v55 = vpop.f32.mrb[25].mxu1 }
 0x20a   :  { %v592_v56 = vadd.f32 %v2143_v22, %v591_v55  ;;  %v1676_v57 = vpop.f32.mrb[26].mxu1  ;;  %1717 = vmatprep.mubr.bf16.mxu0 %v720_v52 }
 0x20b   :  { %v603_v59 = vadd.f32 %v1676_v57, %v2143_v22  ;;  %v594_v60 = vpop.f32.mrb[27].mxu1  ;;  %1718 = vmatmul.mubr.bf16.gmra.mrb[20].mxu0 %v721_v51  ;;  %v696_v63 = vmax.f32 %v600_v54, 0.0 }
 0x20c   :  { %v595_v62 = vadd.f32 %v2143_v22, %v594_v60  ;;  %v694_v1 = vmax.f32 %v592_v56, 0.0 }
 0x20d   :  { %v697_v0 = vmax.f32 %v603_v59, 0.0 }
 0x20e   :  { %v695_v16 = vmax.f32 %v595_v62, 0.0 }
 0x20f   :  { %v723_v2 = vpack.c.bf16 %v697_v0, %v696_v63 }
 0x210   :  { %v722_v3 = vpack.c.bf16 %v695_v16, %v694_v1  ;;  %v1679_v4 = vpop.f32.mrb[28].mxu1 }
 0x211   :  { %v616_v5 = vadd.f32 %v1679_v4, %v2143_v22  ;;  %v607_v6 = vpop.f32.mrb[29].mxu1 }
 0x212   :  { %v608_v7 = vadd.f32 %v2143_v22, %v607_v6  ;;  %v1680_v8 = vpop.f32.mrb[30].mxu1  ;;  %1721 = vmatprep.mubr.bf16.mxu0 %v722_v3 }
 0x213   :  { %v619_v21 = vadd.f32 %v1680_v8, %v2143_v22  ;;  %v610_v9 = vpop.f32.mrb[31].mxu1  ;;  %1722 = vmatmul.mubr.bf16.gmra.mrb[24].mxu0 %v723_v2  ;;  %v700_v11 = vmax.f32 %v616_v5, 0.0 }
 0x214   :  { %v611_v10 = vadd.f32 %v2143_v22, %v610_v9  ;;  %v698_v14 = vmax.f32 %v608_v7, 0.0 }
 0x215   :  { %v701_v13 = vmax.f32 %v619_v21, 0.0 }
 0x216   :  { %v699_v17 = vmax.f32 %v611_v10, 0.0  ;;  %v1896_v10 = vld [vmem:[#allocation5 + $0x80] sm:$0xff]  }
 0x217   :  { %v725_v18 = vpack.c.bf16 %v701_v13, %v700_v11  ;;  %v1897_v11 = vld [vmem:[#allocation5 + $0x88] sm:$0xff]   ;;  %1793 = vmatprep.subr.bf16.mxu0 %v1896_v10  ;;  %v1898_v13 = vld [vmem:[#allocation5 + $0x90] sm:$0xff]  }
 0x218   :  { %v724_v19 = vpack.c.bf16 %v699_v17, %v698_v14  ;;  %v1683_v20 = vpop.f32.mrb[32].mxu1  ;;  %1794 = vmatpush3.bf16.msra.mxu0 %v1896_v10  ;;  %v1899_v14 = vld [vmem:[#allocation5 + $0x98] sm:$0xff]   ;;  %v1900_v17 = vld [vmem:[#allocation5 + $0xa0] sm:$0xff]  }
 0x219   :  { %v632_v23 = vadd.f32 %v1683_v20, %v2143_v22  ;;  %v623_v24 = vpop.f32.mrb[33].mxu1  ;;  %1795 = vmatprep.subr.bf16.mxu0 %v1897_v11 }
 0x21a   :  { %v624_v25 = vadd.f32 %v2143_v22, %v623_v24  ;;  %v1684_v26 = vpop.f32.mrb[34].mxu1  ;;  %1725 = vmatprep.mubr.bf16.mxu0 %v724_v19  ;;  %v1902_v19 = vld [vmem:[#allocation5 + $0xb0] sm:$0xff]  }
 0x21b   :  { %v635_v29 = vadd.f32 %v1684_v26, %v2143_v22  ;;  %v626_v33 = vpop.f32.mrb[35].mxu1  ;;  %1726 = vmatmul.mubr.bf16.gmra.mrb[28].mxu0 %v725_v18  ;;  %v704_v30 = vmax.f32 %v632_v23, 0.0  ;;  %v1901_v18 = vld [vmem:[#allocation5 + $0xa8] sm:$0xff]  }
 0x21c   :  { %v627_v27 = vadd.f32 %v2143_v22, %v626_v33  ;;  %v702_v31 = vmax.f32 %v624_v25, 0.0  ;;  %1796 = vmatpush3.bf16.msra.mxu0 %v1897_v11 }
 0x21d   :  { %v705_v32 = vmax.f32 %v635_v29, 0.0  ;;  %1797 = vmatprep.subr.bf16.mxu0 %v1898_v13 }
 0x21e   :  { %v703_v58 = vmax.f32 %v627_v27, 0.0 }
 0x21f   :  { %v727_v61 = vpack.c.bf16 %v705_v32, %v704_v30 }
 0x220   :  { %v726_v34 = vpack.c.bf16 %v703_v58, %v702_v31  ;;  %v1687_v28 = vpop.f32.mrb[36].mxu1  ;;  %1798 = vmatpush3.bf16.msra.mxu0 %v1898_v13 }
 0x221   :  { %v648_v35 = vadd.f32 %v1687_v28, %v2143_v22  ;;  %v639_v12 = vpop.f32.mrb[37].mxu1  ;;  %1799 = vmatprep.subr.bf16.mxu0 %v1899_v14 }
 0x222   :  { %v640_v36 = vadd.f32 %v2143_v22, %v639_v12  ;;  %v1688_v37 = vpop.f32.mrb[38].mxu1  ;;  %1729 = vmatprep.mubr.bf16.mxu0 %v726_v34 }
 0x223   :  { %v651_v38 = vadd.f32 %v1688_v37, %v2143_v22  ;;  %v642_v39 = vpop.f32.mrb[39].mxu1  ;;  %1730 = vmatmul.mubr.bf16.gmra.mrb[32].mxu0 %v727_v61  ;;  %v708_v41 = vmax.f32 %v648_v35, 0.0 }
 0x224   :  { %v643_v40 = vadd.f32 %v2143_v22, %v642_v39  ;;  %v706_v43 = vmax.f32 %v640_v36, 0.0  ;;  %1800 = vmatpush3.bf16.msra.mxu0 %v1899_v14 }
 0x225   :  { %v709_v42 = vmax.f32 %v651_v38, 0.0  ;;  %1801 = vmatprep.subr.bf16.mxu0 %v1900_v17 }
 0x226   :  { %v707_v44 = vmax.f32 %v643_v40, 0.0 }
 0x227   :  { %v729_v15 = vpack.c.bf16 %v709_v42, %v708_v41 }
 0x228   :  { %v728_v45 = vpack.c.bf16 %v707_v44, %v706_v43  ;;  %v1691_v46 = vpop.f32.mrb[40].mxu1  ;;  %1802 = vmatpush3.bf16.msra.mxu0 %v1900_v17 }
 0x229   :  { %v664_v47 = vadd.f32 %v1691_v46, %v2143_v22  ;;  %v655_v48 = vpop.f32.mrb[41].mxu1  ;;  %1803 = vmatprep.subr.bf16.mxu0 %v1901_v18 }
 0x22a   :  { %v656_v49 = vadd.f32 %v2143_v22, %v655_v48  ;;  %v1692_v50 = vpop.f32.mrb[42].mxu1  ;;  %1733 = vmatprep.mubr.bf16.mxu0 %v728_v45 }
 0x22b   :  { %v667_v51 = vadd.f32 %v1692_v50, %v2143_v22  ;;  %v658_v52 = vpop.f32.mrb[43].mxu1  ;;  %1734 = vmatmul.mubr.bf16.gmra.mrb[36].mxu0 %v729_v15  ;;  %v712_v54 = vmax.f32 %v664_v47, 0.0 }
 0x22c   :  { %v659_v53 = vadd.f32 %v2143_v22, %v658_v52  ;;  %v710_v56 = vmax.f32 %v656_v49, 0.0  ;;  %1804 = vmatpush3.bf16.msra.mxu0 %v1901_v18 }
 0x22d   :  { %v713_v55 = vmax.f32 %v667_v51, 0.0  ;;  %1805 = vmatprep.subr.bf16.mxu0 %v1902_v19 }
 0x22e   :  { %v711_v57 = vmax.f32 %v659_v53, 0.0 }
 0x22f   :  { %v731_v59 = vpack.c.bf16 %v713_v55, %v712_v54 }
 0x230   :  { %v730_v60 = vpack.c.bf16 %v711_v57, %v710_v56  ;;  %v1695_v62 = vpop.f32.mrb[44].mxu1  ;;  %1806 = vmatpush3.bf16.msra.mxu0 %v1902_v19 }
 0x231   :  { %v680_v63 = vadd.f32 %v1695_v62, %v2143_v22  ;;  %v671_v0 = vpop.f32.mrb[45].mxu1 }
 0x232   :  { %v672_v1 = vadd.f32 %v2143_v22, %v671_v0  ;;  %v1696_v16 = vpop.f32.mrb[46].mxu1  ;;  %1737 = vmatprep.mubr.bf16.mxu0 %v730_v60 }
 0x233   :  { %v683_v2 = vadd.f32 %v1696_v16, %v2143_v22  ;;  %v674_v3 = vpop.f32.mrb[47].mxu1  ;;  %1738 = vmatmul.mubr.bf16.gmra.mrb[40].mxu0 %v731_v59  ;;  %v716_v5 = vmax.f32 %v680_v63, 0.0 }
 0x234   :  { %v675_v4 = vadd.f32 %v2143_v22, %v674_v3  ;;  %v714_v7 = vmax.f32 %v672_v1, 0.0 }
 0x235   :  { %v717_v6 = vmax.f32 %v683_v2, 0.0 }
 0x236   :  { %v715_v8 = vmax.f32 %v675_v4, 0.0 }
 0x237   :  { %v733_v21 = vpack.c.bf16 %v717_v6, %v716_v5 }
 0x238   :  { %v732_v9 = vpack.c.bf16 %v715_v8, %v714_v7 }
 0x23a   :  { %1741 = vmatprep.mubr.bf16.mxu0 %v732_v9 }
 0x23b   :  { %1742 = vmatmul.mubr.bf16.gmra.mrb[44].mxu0 %v733_v21 }
 0x2d6   :  { %v1715_v20 = vpop.f32.mrb[16].mxu0 }
 0x2d7   :  { %v777_v23 = vadd.f32 %v1715_v20, %v2143_v22  ;;  %v768_v24 = vpop.f32.mrb[17].mxu0 }
 0x2d8   :  { %v769_v25 = vadd.f32 %v2143_v22, %v768_v24  ;;  %v1716_v26 = vpop.f32.mrb[18].mxu0 }
 0x2d9   :  { %v780_v29 = vadd.f32 %v1716_v26, %v2143_v22  ;;  %v771_v33 = vpop.f32.mrb[19].mxu0  ;;  %v897_v30 = vmax.f32 %v777_v23, 0.0 }
 0x2da   :  { %v772_v27 = vadd.f32 %v2143_v22, %v771_v33  ;;  %v895_v31 = vmax.f32 %v769_v25, 0.0 }
 0x2db   :  { %v898_v32 = vmax.f32 %v780_v29, 0.0 }
 0x2dc   :  { %v896_v58 = vmax.f32 %v772_v27, 0.0 }
 0x2dd   :  { %v928_v61 = vpack.c.bf16 %v898_v32, %v897_v30 }
 0x2de   :  { %v927_v34 = vpack.c.bf16 %v896_v58, %v895_v31  ;;  %v1719_v28 = vpop.f32.mrb[20].mxu0 }
 0x2df   :  { %v793_v35 = vadd.f32 %v1719_v28, %v2143_v22  ;;  %v784_v12 = vpop.f32.mrb[21].mxu0 }
 0x2e0   :  { %v785_v36 = vadd.f32 %v2143_v22, %v784_v12  ;;  %v1720_v37 = vpop.f32.mrb[22].mxu0  ;;  %1761 = vmatprep.mubr.bf16.mxu1 %v927_v34 }
 0x2e1   :  { %v796_v38 = vadd.f32 %v1720_v37, %v2143_v22  ;;  %v787_v39 = vpop.f32.mrb[23].mxu0  ;;  %1762 = vmatmul.mubr.bf16.vlgmr.msra.gmra.mrb[48].mxu1 %v928_v61  ;;  %v901_v41 = vmax.f32 %v793_v35, 0.0 }
 0x2e2   :  { %v788_v40 = vadd.f32 %v2143_v22, %v787_v39  ;;  %v899_v43 = vmax.f32 %v785_v36, 0.0 }
 0x2e3   :  { %v902_v42 = vmax.f32 %v796_v38, 0.0 }
 0x2e4   :  { %v900_v44 = vmax.f32 %v788_v40, 0.0 }
 0x2e5   :  { %v930_v15 = vpack.c.bf16 %v902_v42, %v901_v41 }
 0x2e6   :  { %v929_v45 = vpack.c.bf16 %v900_v44, %v899_v43  ;;  %v1723_v46 = vpop.f32.mrb[24].mxu0 }
 0x2e7   :  { %v809_v47 = vadd.f32 %v1723_v46, %v2143_v22  ;;  %v800_v48 = vpop.f32.mrb[25].mxu0 }
 0x2e8   :  { %v801_v49 = vadd.f32 %v2143_v22, %v800_v48  ;;  %v1724_v50 = vpop.f32.mrb[26].mxu0  ;;  %1765 = vmatprep.mubr.bf16.mxu1 %v929_v45 }
 0x2e9   :  { %v812_v51 = vadd.f32 %v1724_v50, %v2143_v22  ;;  %v803_v52 = vpop.f32.mrb[27].mxu0  ;;  %1766 = vmatmul.mubr.bf16.gmra.mrb[52].mxu1 %v930_v15  ;;  %v905_v54 = vmax.f32 %v809_v47, 0.0 }
 0x2ea   :  { %v804_v53 = vadd.f32 %v2143_v22, %v803_v52  ;;  %v903_v56 = vmax.f32 %v801_v49, 0.0 }
 0x2eb   :  { %v906_v55 = vmax.f32 %v812_v51, 0.0 }
 0x2ec   :  { %v904_v57 = vmax.f32 %v804_v53, 0.0 }
 0x2ed   :  { %v932_v59 = vpack.c.bf16 %v906_v55, %v905_v54 }
 0x2ee   :  { %v931_v60 = vpack.c.bf16 %v904_v57, %v903_v56  ;;  %v1727_v62 = vpop.f32.mrb[28].mxu0 }
 0x2ef   :  { %v825_v63 = vadd.f32 %v1727_v62, %v2143_v22  ;;  %v816_v0 = vpop.f32.mrb[29].mxu0 }
 0x2f0   :  { %v817_v1 = vadd.f32 %v2143_v22, %v816_v0  ;;  %v1728_v16 = vpop.f32.mrb[30].mxu0  ;;  %1769 = vmatprep.mubr.bf16.mxu1 %v931_v60 }
 0x2f1   :  { %v828_v2 = vadd.f32 %v1728_v16, %v2143_v22  ;;  %v819_v3 = vpop.f32.mrb[31].mxu0  ;;  %1770 = vmatmul.mubr.bf16.gmra.mrb[56].mxu1 %v932_v59  ;;  %v909_v5 = vmax.f32 %v825_v63, 0.0 }
 0x2f2   :  { %v820_v4 = vadd.f32 %v2143_v22, %v819_v3  ;;  %v907_v7 = vmax.f32 %v817_v1, 0.0 }
 0x2f3   :  { %v910_v6 = vmax.f32 %v828_v2, 0.0 }
 0x2f4   :  { %v908_v8 = vmax.f32 %v820_v4, 0.0  ;;  %v1903_v4 = vld [vmem:[#allocation5 + $0xb8] sm:$0xff]  }
 0x2f5   :  { %v934_v21 = vpack.c.bf16 %v910_v6, %v909_v5  ;;  %1807 = vmatprep.subr.bf16.mxu0 %v1903_v4 }
 0x2f6   :  { %v933_v9 = vpack.c.bf16 %v908_v8, %v907_v7  ;;  %v1731_v10 = vpop.f32.mrb[32].mxu0  ;;  %1808 = vmatpush3.bf16.msra.mxu0 %v1903_v4 }
 0x2f7   :  { %v841_v11 = vadd.f32 %v1731_v10, %v2143_v22  ;;  %v832_v13 = vpop.f32.mrb[33].mxu0 }
 0x2f8   :  { %v833_v14 = vadd.f32 %v2143_v22, %v832_v13  ;;  %v1732_v17 = vpop.f32.mrb[34].mxu0  ;;  %1773 = vmatprep.mubr.bf16.mxu1 %v933_v9 }
 0x2f9   :  { %v844_v18 = vadd.f32 %v1732_v17, %v2143_v22  ;;  %v835_v19 = vpop.f32.mrb[35].mxu0  ;;  %1774 = vmatmul.mubr.bf16.gmra.mrb[60].mxu1 %v934_v21  ;;  %v913_v23 = vmax.f32 %v841_v11, 0.0 }
 0x2fa   :  { %v836_v20 = vadd.f32 %v2143_v22, %v835_v19  ;;  %v911_v25 = vmax.f32 %v833_v14, 0.0 }
 0x2fb   :  { %v914_v24 = vmax.f32 %v844_v18, 0.0 }
 0x2fc   :  { %v912_v26 = vmax.f32 %v836_v20, 0.0 }
 0x2fd   :  { %v936_v29 = vpack.c.bf16 %v914_v24, %v913_v23 }
 0x2fe   :  { %v935_v33 = vpack.c.bf16 %v912_v26, %v911_v25  ;;  %v1735_v27 = vpop.f32.mrb[36].mxu0 }
 0x2ff   :  { %v857_v30 = vadd.f32 %v1735_v27, %v2143_v22  ;;  %v848_v32 = vpop.f32.mrb[37].mxu0 }
 0x300   :  { %v849_v31 = vadd.f32 %v2143_v22, %v848_v32  ;;  %v1736_v58 = vpop.f32.mrb[38].mxu0  ;;  %1777 = vmatprep.mubr.bf16.mxu1 %v935_v33 }
 0x301   :  { %v860_v61 = vadd.f32 %v1736_v58, %v2143_v22  ;;  %v851_v34 = vpop.f32.mrb[39].mxu0  ;;  %1778 = vmatmul.mubr.bf16.gmra.mrb[64].mxu1 %v936_v29  ;;  %v917_v35 = vmax.f32 %v857_v30, 0.0 }
 0x302   :  { %v852_v28 = vadd.f32 %v2143_v22, %v851_v34  ;;  %v915_v36 = vmax.f32 %v849_v31, 0.0 }
 0x303   :  { %v918_v12 = vmax.f32 %v860_v61, 0.0 }
 0x304   :  { %v916_v37 = vmax.f32 %v852_v28, 0.0 }
 0x305   :  { %v938_v38 = vpack.c.bf16 %v918_v12, %v917_v35 }
 0x306   :  { %v937_v39 = vpack.c.bf16 %v916_v37, %v915_v36  ;;  %v1739_v40 = vpop.f32.mrb[40].mxu0 }
 0x307   :  { %v873_v41 = vadd.f32 %v1739_v40, %v2143_v22  ;;  %v864_v42 = vpop.f32.mrb[41].mxu0 }
 0x308   :  { %v865_v43 = vadd.f32 %v2143_v22, %v864_v42  ;;  %v1740_v44 = vpop.f32.mrb[42].mxu0  ;;  %1781 = vmatprep.mubr.bf16.mxu1 %v937_v39 }
 0x309   :  { %v876_v15 = vadd.f32 %v1740_v44, %v2143_v22  ;;  %v867_v45 = vpop.f32.mrb[43].mxu0  ;;  %1782 = vmatmul.mubr.bf16.gmra.mrb[68].mxu1 %v938_v38  ;;  %v921_v47 = vmax.f32 %v873_v41, 0.0 }
 0x30a   :  { %v868_v46 = vadd.f32 %v2143_v22, %v867_v45  ;;  %v919_v49 = vmax.f32 %v865_v43, 0.0 }
 0x30b   :  { %v922_v48 = vmax.f32 %v876_v15, 0.0 }
 0x30c   :  { %v920_v50 = vmax.f32 %v868_v46, 0.0 }
 0x30d   :  { %v940_v51 = vpack.c.bf16 %v922_v48, %v921_v47 }
 0x30e   :  { %v939_v52 = vpack.c.bf16 %v920_v50, %v919_v49  ;;  %v1743_v53 = vpop.f32.mrb[44].mxu0 }
 0x30f   :  { %v889_v54 = vadd.f32 %v1743_v53, %v2143_v22  ;;  %v880_v55 = vpop.f32.mrb[45].mxu0 }
 0x310   :  { %v881_v56 = vadd.f32 %v2143_v22, %v880_v55  ;;  %v1744_v57 = vpop.f32.mrb[46].mxu0  ;;  %1785 = vmatprep.mubr.bf16.mxu1 %v939_v52 }
 0x311   :  { %v892_v59 = vadd.f32 %v1744_v57, %v2143_v22  ;;  %v883_v60 = vpop.f32.mrb[47].mxu0  ;;  %1786 = vmatmul.mubr.bf16.gmra.mrb[72].mxu1 %v940_v51  ;;  %v925_v63 = vmax.f32 %v889_v54, 0.0 }
 0x312   :  { %v884_v62 = vadd.f32 %v2143_v22, %v883_v60  ;;  %v923_v1 = vmax.f32 %v881_v56, 0.0 }
 0x313   :  { %v926_v0 = vmax.f32 %v892_v59, 0.0 }
 0x314   :  { %v924_v16 = vmax.f32 %v884_v62, 0.0 }
 0x315   :  { %v942_v2 = vpack.c.bf16 %v926_v0, %v925_v63 }
 0x316   :  { %v941_v3 = vpack.c.bf16 %v924_v16, %v923_v1 }
 0x318   :  { %1789 = vmatprep.mubr.bf16.mxu1 %v941_v3 }
 0x319   :  { %1790 = vmatmul.mubr.bf16.gmra.mrb[76].mxu1 %v942_v2 }
 0x3b4   :  { %v1763_v5 = vpop.f32.mrb[48].mxu1 }
 0x3b5   :  { %v986_v6 = vadd.f32 %v1763_v5, %v2143_v22  ;;  %v977_v7 = vpop.f32.mrb[49].mxu1 }
 0x3b6   :  { %v978_v8 = vadd.f32 %v2143_v22, %v977_v7  ;;  %v1764_v21 = vpop.f32.mrb[50].mxu1 }
 0x3b7   :  { %v989_v9 = vadd.f32 %v1764_v21, %v2143_v22  ;;  %v980_v10 = vpop.f32.mrb[51].mxu1  ;;  %v1106_v13 = vmax.f32 %v986_v6, 0.0 }
 0x3b8   :  { %v981_v11 = vadd.f32 %v2143_v22, %v980_v10  ;;  %v1104_v17 = vmax.f32 %v978_v8, 0.0 }
 0x3b9   :  { %v1107_v14 = vmax.f32 %v989_v9, 0.0 }
 0x3ba   :  { %v1105_v18 = vmax.f32 %v981_v11, 0.0 }
 0x3bb   :  { %v1137_v19 = vpack.c.bf16 %v1107_v14, %v1106_v13 }
 0x3bc   :  { %v1136_v20 = vpack.c.bf16 %v1105_v18, %v1104_v17  ;;  %v1767_v23 = vpop.f32.mrb[52].mxu1 }
 0x3bd   :  { %v1002_v24 = vadd.f32 %v1767_v23, %v2143_v22  ;;  %v993_v25 = vpop.f32.mrb[53].mxu1 }
 0x3be   :  { %v994_v26 = vadd.f32 %v2143_v22, %v993_v25  ;;  %v1768_v29 = vpop.f32.mrb[54].mxu1  ;;  %1809 = vmatprep.mubr.bf16.mxu0 %v1136_v20 }
 0x3bf   :  { %v1005_v33 = vadd.f32 %v1768_v29, %v2143_v22  ;;  %v996_v27 = vpop.f32.mrb[55].mxu1  ;;  %1810 = vmatmul.mubr.bf16.vlgmr.msra.gmra.mrb[48].mxu0 %v1137_v19  ;;  %v1110_v32 = vmax.f32 %v1002_v24, 0.0 }
 0x3c0   :  { %v997_v30 = vadd.f32 %v2143_v22, %v996_v27  ;;  %v1108_v58 = vmax.f32 %v994_v26, 0.0 }
 0x3c1   :  { %v1111_v31 = vmax.f32 %v1005_v33, 0.0 }
 0x3c2   :  { %v1109_v61 = vmax.f32 %v997_v30, 0.0 }
 0x3c3   :  { %v1139_v34 = vpack.c.bf16 %v1111_v31, %v1110_v32 }
 0x3c4   :  { %v1138_v28 = vpack.c.bf16 %v1109_v61, %v1108_v58  ;;  %v1771_v35 = vpop.f32.mrb[56].mxu1 }
 0x3c5   :  { %v1018_v12 = vadd.f32 %v1771_v35, %v2143_v22  ;;  %v1009_v36 = vpop.f32.mrb[57].mxu1 }
 0x3c6   :  { %v1010_v37 = vadd.f32 %v2143_v22, %v1009_v36  ;;  %v1772_v38 = vpop.f32.mrb[58].mxu1  ;;  %1813 = vmatprep.mubr.bf16.mxu0 %v1138_v28 }
 0x3c7   :  { %v1021_v39 = vadd.f32 %v1772_v38, %v2143_v22  ;;  %v1012_v40 = vpop.f32.mrb[59].mxu1  ;;  %1814 = vmatmul.mubr.bf16.gmra.mrb[52].mxu0 %v1139_v34  ;;  %v1114_v42 = vmax.f32 %v1018_v12, 0.0 }
 0x3c8   :  { %v1013_v41 = vadd.f32 %v2143_v22, %v1012_v40  ;;  %v1112_v44 = vmax.f32 %v1010_v37, 0.0 }
 0x3c9   :  { %v1115_v43 = vmax.f32 %v1021_v39, 0.0 }
 0x3ca   :  { %v1113_v15 = vmax.f32 %v1013_v41, 0.0 }
 0x3cb   :  { %v1141_v45 = vpack.c.bf16 %v1115_v43, %v1114_v42 }
 0x3cc   :  { %v1140_v46 = vpack.c.bf16 %v1113_v15, %v1112_v44  ;;  %v1775_v47 = vpop.f32.mrb[60].mxu1 }
 0x3cd   :  { %v1034_v48 = vadd.f32 %v1775_v47, %v2143_v22  ;;  %v1025_v49 = vpop.f32.mrb[61].mxu1 }
 0x3ce   :  { %v1026_v50 = vadd.f32 %v2143_v22, %v1025_v49  ;;  %v1776_v51 = vpop.f32.mrb[62].mxu1  ;;  %1817 = vmatprep.mubr.bf16.mxu0 %v1140_v46 }
 0x3cf   :  { %v1037_v52 = vadd.f32 %v1776_v51, %v2143_v22  ;;  %v1028_v53 = vpop.f32.mrb[63].mxu1  ;;  %1818 = vmatmul.mubr.bf16.gmra.mrb[56].mxu0 %v1141_v45  ;;  %v1118_v55 = vmax.f32 %v1034_v48, 0.0 }
 0x3d0   :  { %v1029_v54 = vadd.f32 %v2143_v22, %v1028_v53  ;;  %v1116_v57 = vmax.f32 %v1026_v50, 0.0 }
 0x3d1   :  { %v1119_v56 = vmax.f32 %v1037_v52, 0.0 }
 0x3d2   :  { %v1117_v59 = vmax.f32 %v1029_v54, 0.0  ;;  %v2244_v54 = vld [vmem:[%s2292_s2 + $0x2] ss:$0 sm:$0xff]  ;;  %s1980_s2 = smov [#allocation7]  }
 0x3d3   :  { %v1143_v60 = vpack.c.bf16 %v1119_v56, %v1118_v55  ;;  %s1423_s15 = sshll.u32 %s1980_s2, 4  ;;  %s1424_s15 = int_to_ptr.vmem [resolvable:$true] %s1423_s15 }
 0x3d4   :  { %v1142_v62 = vpack.c.bf16 %v1117_v59, %v1116_v57  ;;  %v1779_v63 = vpop.f32.mrb[64].mxu1  ;;  %s1948_s16 = scalar_lea.vmem %s1424_s15, 4096  ;;  %p1953_p3 = scmp.lt.s32.totalorder %s1424_s15, %s1424_s15 }
 0x3d5   :  { %v1050_v0 = vadd.f32 %v1779_v63, %v2143_v22  ;;  %v1041_v1 = vpop.f32.mrb[65].mxu1  ;;  %p1949_p2 = scmp.ne.s32.totalorder %s1424_s15, %s1948_s16  ;;  %p1954_p4 = scmp.lt.s32.totalorder %s1948_s16, %s1948_s16 }
 0x3d6   :  { %v1042_v16 = vadd.f32 %v2143_v22, %v1041_v1  ;;  %v1780_v2 = vpop.f32.mrb[66].mxu1  ;;  %1821 = vmatprep.mubr.bf16.mxu0 %v1142_v62 }
 0x3d7   :  { %v1053_v3 = vadd.f32 %v1780_v2, %v2143_v22  ;;  %v1044_v4 = vpop.f32.mrb[67].mxu1  ;;  %1822 = vmatmul.mubr.bf16.gmra.mrb[60].mxu0 %v1143_v60  ;;  %v1122_v6 = vmax.f32 %v1050_v0, 0.0  ;;  %p1955_p5 = por %p1954_p4, %p1953_p3 }
 0x3d8   :  { %v1045_v5 = vadd.f32 %v2143_v22, %v1044_v4  ;;  %v1120_v8 = vmax.f32 %v1042_v16, 0.0 }
 0x3d9   :  { %v1123_v7 = vmax.f32 %v1053_v3, 0.0  ;;  %p1956_p6 = pnand %p1955_p5, %p1949_p2 }
 0x3da   :  { %v1121_v21 = vmax.f32 %v1045_v5, 0.0 }
 0x3db   :  { %v1145_v9 = vpack.c.bf16 %v1123_v7, %v1122_v6 }
 0x3dc   :  { %v1144_v10 = vpack.c.bf16 %v1121_v21, %v1120_v8  ;;  %v1783_v11 = vpop.f32.mrb[68].mxu1 }
 0x3dd   :  { %v1066_v13 = vadd.f32 %v1783_v11, %v2143_v22  ;;  %v1057_v14 = vpop.f32.mrb[69].mxu1 }
 0x3de   :  { %v1058_v17 = vadd.f32 %v2143_v22, %v1057_v14  ;;  %v1784_v18 = vpop.f32.mrb[70].mxu1  ;;  %1825 = vmatprep.mubr.bf16.mxu0 %v1144_v10 }
 0x3df   :  { %v1069_v19 = vadd.f32 %v1784_v18, %v2143_v22  ;;  %v1060_v20 = vpop.f32.mrb[71].mxu1  ;;  %1826 = vmatmul.mubr.bf16.gmra.mrb[64].mxu0 %v1145_v9  ;;  %v1126_v24 = vmax.f32 %v1066_v13, 0.0 }
 0x3e0   :  { %v1061_v23 = vadd.f32 %v2143_v22, %v1060_v20  ;;  %v1124_v26 = vmax.f32 %v1058_v17, 0.0 }
 0x3e1   :  { %v1127_v25 = vmax.f32 %v1069_v19, 0.0 }
 0x3e2   :  { %v1125_v29 = vmax.f32 %v1061_v23, 0.0 }
 0x3e3   :  { %v1147_v33 = vpack.c.bf16 %v1127_v25, %v1126_v24 }
 0x3e4   :  { %v1146_v27 = vpack.c.bf16 %v1125_v29, %v1124_v26  ;;  %v1787_v30 = vpop.f32.mrb[72].mxu1 }
 0x3e5   :  { %v1082_v32 = vadd.f32 %v1787_v30, %v2143_v22  ;;  %v1073_v31 = vpop.f32.mrb[73].mxu1 }
 0x3e6   :  { %v1074_v58 = vadd.f32 %v2143_v22, %v1073_v31  ;;  %v1788_v61 = vpop.f32.mrb[74].mxu1  ;;  %1829 = vmatprep.mubr.bf16.mxu0 %v1146_v27 }
 0x3e7   :  { %v1085_v34 = vadd.f32 %v1788_v61, %v2143_v22  ;;  %v1076_v28 = vpop.f32.mrb[75].mxu1  ;;  %1830 = vmatmul.mubr.bf16.gmra.mrb[68].mxu0 %v1147_v33  ;;  %v1130_v12 = vmax.f32 %v1082_v32, 0.0 }
 0x3e8   :  { %v1077_v35 = vadd.f32 %v2143_v22, %v1076_v28  ;;  %v1128_v37 = vmax.f32 %v1074_v58, 0.0 }
 0x3e9   :  { %v1131_v36 = vmax.f32 %v1085_v34, 0.0 }
 0x3ea   :  { %v1129_v38 = vmax.f32 %v1077_v35, 0.0 }
 0x3eb   :  { %v1149_v39 = vpack.c.bf16 %v1131_v36, %v1130_v12 }
 0x3ec   :  { %v1148_v40 = vpack.c.bf16 %v1129_v38, %v1128_v37  ;;  %v1791_v41 = vpop.f32.mrb[76].mxu1 }
 0x3ed   :  { %v1098_v42 = vadd.f32 %v1791_v41, %v2143_v22  ;;  %v1089_v43 = vpop.f32.mrb[77].mxu1 }
 0x3ee   :  { %v1090_v44 = vadd.f32 %v2143_v22, %v1089_v43  ;;  %v1792_v15 = vpop.f32.mrb[78].mxu1  ;;  %1833 = vmatprep.mubr.bf16.mxu0 %v1148_v40 }
 0x3ef   :  { %v1101_v45 = vadd.f32 %v1792_v15, %v2143_v22  ;;  %v1092_v46 = vpop.f32.mrb[79].mxu1  ;;  %1834 = vmatmul.mubr.bf16.gmra.mrb[72].mxu0 %v1149_v39  ;;  %v1134_v48 = vmax.f32 %v1098_v42, 0.0 }
 0x3f0   :  { %v1093_v47 = vadd.f32 %v2143_v22, %v1092_v46  ;;  %v1132_v50 = vmax.f32 %v1090_v44, 0.0 }
 0x3f1   :  { %v1135_v49 = vmax.f32 %v1101_v45, 0.0 }
 0x3f2   :  { %v1133_v51 = vmax.f32 %v1093_v47, 0.0 }
 0x3f3   :  { %v1151_v52 = vpack.c.bf16 %v1135_v49, %v1134_v48 }
 0x3f4   :  { %v1150_v53 = vpack.c.bf16 %v1133_v51, %v1132_v50 }
 0x3f6   :  { %1837 = vmatprep.mubr.bf16.mxu0 %v1150_v53 }
 0x3f7   :  { %1838 = vmatmul.mubr.bf16.gmra.mrb[76].mxu0 %v1151_v52 }
 0x492   :  { %v1811_v55 = vpop.f32.mrb[48].mxu0 }
 0x493   :  { %v1268_v56 = vadd.f32 %v1811_v55, %v2244_v54  ;;  %v1259_v57 = vpop.f32.mrb[49].mxu0 }
 0x494   :  { %v1260_v59 = vadd.f32 %v2244_v54, %v1259_v57  ;;  %v1812_v22 = vpop.f32.mrb[50].mxu0 }
 0x495   :  { %1388 = vst [vmem:[#allocation7 + $0x10] sm:$0xff] %v1268_v56  ;;  %v1271_v60 = vadd.f32 %v1812_v22, %v2244_v54  ;;  %v1262_v62 = vpop.f32.mrb[51].mxu0 }
 0x496   :  { %1386 = vst [vmem:[#allocation7] sm:$0xff] %v1260_v59  ;;  %v1263_v63 = vadd.f32 %v2244_v54, %v1262_v62 }
 0x497   :  { %1389 = vst [vmem:[#allocation7 + $0x18] sm:$0xff] %v1271_v60 }
 0x498   :  { %1387 = vst [vmem:[#allocation7 + $0x8] sm:$0xff] %v1263_v63 }
 0x49a   :  { %v1815_v0 = vpop.f32.mrb[52].mxu0 }
 0x49b   :  { %v1284_v1 = vadd.f32 %v1815_v0, %v2244_v54  ;;  %v1275_v16 = vpop.f32.mrb[53].mxu0 }
 0x49c   :  { %v1276_v2 = vadd.f32 %v2244_v54, %v1275_v16  ;;  %v1816_v3 = vpop.f32.mrb[54].mxu0 }
 0x49d   :  { %1392 = vst [vmem:[#allocation7 + $0x30] sm:$0xff] %v1284_v1  ;;  %v1287_v4 = vadd.f32 %v1816_v3, %v2244_v54  ;;  %v1278_v5 = vpop.f32.mrb[55].mxu0 }
 0x49e   :  { %1390 = vst [vmem:[#allocation7 + $0x20] sm:$0xff] %v1276_v2  ;;  %v1279_v6 = vadd.f32 %v2244_v54, %v1278_v5 }
 0x49f   :  { %1393 = vst [vmem:[#allocation7 + $0x38] sm:$0xff] %v1287_v4 }
 0x4a0   :  { %1391 = vst [vmem:[#allocation7 + $0x28] sm:$0xff] %v1279_v6 }
 0x4a2   :  { %v1819_v7 = vpop.f32.mrb[56].mxu0 }
 0x4a3   :  { %v1300_v8 = vadd.f32 %v1819_v7, %v2244_v54  ;;  %v1291_v21 = vpop.f32.mrb[57].mxu0 }
 0x4a4   :  { %v1292_v9 = vadd.f32 %v2244_v54, %v1291_v21  ;;  %v1820_v10 = vpop.f32.mrb[58].mxu0 }
 0x4a5   :  { %1396 = vst [vmem:[#allocation7 + $0x50] sm:$0xff] %v1300_v8  ;;  %v1303_v11 = vadd.f32 %v1820_v10, %v2244_v54  ;;  %v1294_v13 = vpop.f32.mrb[59].mxu0 }
 0x4a6   :  { %1394 = vst [vmem:[#allocation7 + $0x40] sm:$0xff] %v1292_v9  ;;  %v1295_v14 = vadd.f32 %v2244_v54, %v1294_v13 }
 0x4a7   :  { %1397 = vst [vmem:[#allocation7 + $0x58] sm:$0xff] %v1303_v11 }
 0x4a8   :  { %1395 = vst [vmem:[#allocation7 + $0x48] sm:$0xff] %v1295_v14 }
 0x4aa   :  { %v1823_v17 = vpop.f32.mrb[60].mxu0 }
 0x4ab   :  { %v1316_v18 = vadd.f32 %v1823_v17, %v2244_v54  ;;  %v1307_v19 = vpop.f32.mrb[61].mxu0 }
 0x4ac   :  { %v1308_v20 = vadd.f32 %v2244_v54, %v1307_v19  ;;  %v1824_v23 = vpop.f32.mrb[62].mxu0 }
 0x4ad   :  { %1400 = vst [vmem:[#allocation7 + $0x70] sm:$0xff] %v1316_v18  ;;  %v1319_v24 = vadd.f32 %v1824_v23, %v2244_v54  ;;  %v1310_v25 = vpop.f32.mrb[63].mxu0 }
 0x4ae   :  { %1398 = vst [vmem:[#allocation7 + $0x60] sm:$0xff] %v1308_v20  ;;  %v1311_v26 = vadd.f32 %v2244_v54, %v1310_v25 }
 0x4af   :  { %1401 = vst [vmem:[#allocation7 + $0x78] sm:$0xff] %v1319_v24 }
 0x4b0   :  { %1399 = vst [vmem:[#allocation7 + $0x68] sm:$0xff] %v1311_v26 }
 0x4b2   :  { %v1827_v29 = vpop.f32.mrb[64].mxu0 }
 0x4b3   :  { %v1332_v33 = vadd.f32 %v1827_v29, %v2244_v54  ;;  %v1323_v27 = vpop.f32.mrb[65].mxu0 }
 0x4b4   :  { %v1324_v30 = vadd.f32 %v2244_v54, %v1323_v27  ;;  %v1828_v32 = vpop.f32.mrb[66].mxu0 }
 0x4b5   :  { %1404 = vst [vmem:[#allocation7 + $0x90] sm:$0xff] %v1332_v33  ;;  %v1335_v31 = vadd.f32 %v1828_v32, %v2244_v54  ;;  %v1326_v58 = vpop.f32.mrb[67].mxu0 }
 0x4b6   :  { %1402 = vst [vmem:[#allocation7 + $0x80] sm:$0xff] %v1324_v30  ;;  %v1327_v61 = vadd.f32 %v2244_v54, %v1326_v58 }
 0x4b7   :  { %1405 = vst [vmem:[#allocation7 + $0x98] sm:$0xff] %v1335_v31 }
 0x4b8   :  { %1403 = vst [vmem:[#allocation7 + $0x88] sm:$0xff] %v1327_v61 }
 0x4ba   :  { %v1831_v34 = vpop.f32.mrb[68].mxu0 }
 0x4bb   :  { %v1348_v28 = vadd.f32 %v1831_v34, %v2244_v54  ;;  %v1339_v35 = vpop.f32.mrb[69].mxu0 }
 0x4bc   :  { %v1340_v12 = vadd.f32 %v2244_v54, %v1339_v35  ;;  %v1832_v36 = vpop.f32.mrb[70].mxu0 }
 0x4bd   :  { %1408 = vst [vmem:[#allocation7 + $0xb0] sm:$0xff] %v1348_v28  ;;  %v1351_v37 = vadd.f32 %v1832_v36, %v2244_v54  ;;  %v1342_v38 = vpop.f32.mrb[71].mxu0 }
 0x4be   :  { %1406 = vst [vmem:[#allocation7 + $0xa0] sm:$0xff] %v1340_v12  ;;  %v1343_v39 = vadd.f32 %v2244_v54, %v1342_v38 }
 0x4bf   :  { %1409 = vst [vmem:[#allocation7 + $0xb8] sm:$0xff] %v1351_v37 }
 0x4c0   :  { %1407 = vst [vmem:[#allocation7 + $0xa8] sm:$0xff] %v1343_v39 }
 0x4c2   :  { %v1835_v40 = vpop.f32.mrb[72].mxu0 }
 0x4c3   :  { %v1364_v41 = vadd.f32 %v1835_v40, %v2244_v54  ;;  %v1355_v42 = vpop.f32.mrb[73].mxu0 }
 0x4c4   :  { %v1356_v43 = vadd.f32 %v2244_v54, %v1355_v42  ;;  %v1836_v44 = vpop.f32.mrb[74].mxu0 }
 0x4c5   :  { %1412 = vst [vmem:[#allocation7 + $0xd0] sm:$0xff] %v1364_v41  ;;  %v1367_v15 = vadd.f32 %v1836_v44, %v2244_v54  ;;  %v1358_v45 = vpop.f32.mrb[75].mxu0 }
 0x4c6   :  { %1410 = vst [vmem:[#allocation7 + $0xc0] sm:$0xff] %v1356_v43  ;;  %v1359_v46 = vadd.f32 %v2244_v54, %v1358_v45 }
 0x4c7   :  { %1413 = vst [vmem:[#allocation7 + $0xd8] sm:$0xff] %v1367_v15 }
 0x4c8   :  { %1411 = vst [vmem:[#allocation7 + $0xc8] sm:$0xff] %v1359_v46 }
 0x4ca   :  { %v1839_v47 = vpop.f32.mrb[76].mxu0 }
 0x4cb   :  { %v1380_v48 = vadd.f32 %v1839_v47, %v2244_v54  ;;  %v1371_v49 = vpop.f32.mrb[77].mxu0 }
 0x4cc   :  { %v1372_v50 = vadd.f32 %v2244_v54, %v1371_v49  ;;  %v1840_v51 = vpop.f32.mrb[78].mxu0 }
 0x4cd   :  { %1416 = vst [vmem:[#allocation7 + $0xf0] sm:$0xff] %v1380_v48  ;;  %v1383_v52 = vadd.f32 %v1840_v51, %v2244_v54  ;;  %v1374_v53 = vpop.f32.mrb[79].mxu0 }
 0x4ce   :  { %1414 = vst [vmem:[#allocation7 + $0xe0] sm:$0xff] %v1372_v50  ;;  %v1375_v55 = vadd.f32 %v2244_v54, %v1374_v53 }
 0x4cf   :  { %1417 = vst [vmem:[#allocation7 + $0xf8] sm:$0xff] %v1383_v52 }
 0x4d0   :  { %1415 = vst [vmem:[#allocation7 + $0xe8] sm:$0xff] %v1375_v55 }
 0x4d1   :  { %1959 = shalt.err (!%p1956_p6)
}
 0x4d2   :  { %s1960_s19 = scalar_lea.hbm %s2293_s3, 4096 }
 0x4d3   :  { %p1961_p7 = scmp.ne.s32.totalorder %s2293_s3, %s1960_s19  ;;  %p1964_p8 = scmp.lt.u32.totalorder %s1960_s19, %s2293_s3 }
 0x4d5   :  { %p1966_p9 = pnand %p1964_p8, %p1961_p7 }
 0x4d7   :  { %1969 = shalt.err (!%p1966_p9)
}
 0x4d8   :  { %s1981_s24 = smov 128   ;;  %s1982_s25 = smov 8  }
 0x4d9   :  { %1429 = dma.vmem_to_hbm [thread:$0]  %s1424_s15, 4096, %s2293_s3, [#allocation4], %s1981_s24, %s1981_s24, %s1982_s25  }
 0x4da   :  { %1974 = dma.done.wait [#allocation4], 4096  }
 0x4db   :  { %1975 = vsyncadd [#allocation4], 4294963200 }
 0x4dc   :  { %1433 = vsyncpa [#allocation3], 1 }
 0x4dd   :  { %1434 = vsyncpa [#allocation6], 1 }
 0x4de   :  { %1435 = vsyncpa [#allocation4], 1 }

</bundles_post_ra>
